<compile_context>
chip_gen: v7x
topology: tpu7x:2x2x1
jax: 0.10.0
libtpu: 0.0.40
codegen_flags: <defaults>
</compile_context>

<pallas_src>
import jax
import jax.numpy as jnp
from jax import lax
from jax.experimental import pallas as pl
from jax.experimental.pallas import tpu as pltpu

_LANE = 128
_SUB = 8
_TARGET_TILE_BYTES = 1 << 20   # ~1 MiB of VMEM-layout bytes per input tile
_NUM_PARTIALS = 2              # leading "parallel" axis (v7x has 2 TensorCores)


def _round_up(x, m):
    return ((x + m - 1) // m) * m


def clique_alpha_loss(y_value, value, y_policy, policy):
    """y_value, value: (B,); y_policy, policy: (B, A). Returns scalar f32."""
    B, A = int(y_policy.shape[0]), int(y_policy.shape[1])

    # ---- tile sizing over the batch axis (multiple of 8 sublanes, or full B) ----
    lanes = _round_up(A, _LANE)                    # lane-padded width in VMEM
    itemsize = jnp.dtype(y_policy.dtype).itemsize
    cap = max(_SUB, (_TARGET_TILE_BYTES // (lanes * itemsize)) // _SUB * _SUB)
    if cap >= B:
        tile_b = B                                 # single tile == full array dims
    else:
        n = pl.cdiv(B, cap)
        tile_b = _round_up(pl.cdiv(B, n), _SUB)    # balanced tiles, no 2x padding waste
    n_tiles = pl.cdiv(B, tile_b)                   # valid block count along batch
    n_half = pl.cdiv(n_tiles, _NUM_PARTIALS)       # tiles per partial
    grid = (_NUM_PARTIALS, n_half)

    # Rows >= B (ragged last tile and/or the duplicated clamped tile when
    # n_tiles is odd) must contribute exactly 0 — masked with a select below.
    needs_mask = (_NUM_PARTIALS * n_half * tile_b) != B

    def policy_index_map(c, i):
        # Clamp so the DMA block index stays in range even when a partial owns
        # a duplicated (fully masked) tile.
        return (jnp.minimum(c * n_half + i, n_tiles - 1), 0)

    def kernel(yp_ref, p_ref, out_ref, acc_ref):
        c = pl.program_id(0)
        i = pl.program_id(1)

        @pl.when(i == 0)
        def _():
            acc_ref[...] = jnp.zeros_like(acc_ref)

        p = p_ref[...].astype(jnp.float32)
        yp = yp_ref[...].astype(jnp.float32)
        contrib = p * jnp.log(1e-8 + yp)           # sign folded into the wrapper

        if needs_mask:
            row = (c * n_half + i) * tile_b + lax.broadcasted_iota(
                jnp.int32, (tile_b, A), 0)
            contrib = jnp.where(row < B, contrib, 0.0)   # select: NaN/garbage safe

        acc_ref[...] += contrib                    # pure VPU, no per-step reduce

        @pl.when(i == n_half - 1)
        def _():
            # One cross-lane/sublane reduce per partial, only at finalize.
            s = jnp.sum(acc_ref[...]).reshape(1, 1)
            out_ref[...] = jnp.broadcast_to(s, (1, _LANE))

    partials = pl.pallas_call(
        kernel,
        out_shape=jax.ShapeDtypeStruct((1, _NUM_PARTIALS * _LANE), jnp.float32),
        grid=grid,
        in_specs=[
            pl.BlockSpec((tile_b, A), policy_index_map),
            pl.BlockSpec((tile_b, A), policy_index_map),
        ],
        # lane-dense (1,128) output block per partial, distinct block per core
        out_specs=pl.BlockSpec((1, _LANE), lambda c, i: (0, c)),
        scratch_shapes=[pltpu.VMEM((tile_b, A), jnp.float32)],
        compiler_params=pltpu.CompilerParams(
            dimension_semantics=("parallel", "arbitrary"),
        ),
    )(y_policy, policy)

    # sum of policy * log(1e-8 + y_policy) over the whole batch
    policy_dot = jnp.sum(partials.reshape(_NUM_PARTIALS, _LANE)[:, 0])

    # O(B) value-error sum in plain JAX (per review; trivial next to B*A work).
    v = value.reshape(-1).astype(jnp.float32)
    yv = y_value.reshape(-1).astype(jnp.float32)
    value_sq = jnp.sum((v - yv) ** 2)

    return (value_sq - policy_dot) * (1.0 / B)


def _reference_loss(y_value, value, y_policy, policy):
    value_error = (value.astype(jnp.float32) - y_value.astype(jnp.float32)) ** 2
    policy_error = jnp.sum(
        -policy.astype(jnp.float32) * jnp.log(1e-8 + y_policy.astype(jnp.float32)),
        axis=1,
    )
    return jnp.mean(value_error + policy_error)


if __name__ == "__main__":
    key = jax.random.PRNGKey(0)

    # Small deterministic cases: one tiny aligned case and one ragged case
    # (B not a multiple of 8, A not a multiple of 128) to exercise masking.
    for (B, A) in [(8, 32), (19, 96)]:
        k1, k2, k3, k4, key = jax.random.split(key, 5)

        # value targets / predictions in [-1, 1]
        y_value = jnp.tanh(jax.random.normal(k1, (B,), dtype=jnp.float32))
        value = jnp.tanh(jax.random.normal(k2, (B,), dtype=jnp.float32))

        # policy distributions (softmax -> positive, rows sum to 1)
        y_policy = jax.nn.softmax(
            jax.random.normal(k3, (B, A), dtype=jnp.float32), axis=1)
        policy = jax.nn.softmax(
            jax.random.normal(k4, (B, A), dtype=jnp.float32), axis=1)

        loss = clique_alpha_loss(y_value, value, y_policy, policy)
        jax.block_until_ready(loss)

        ref = _reference_loss(y_value, value, y_policy, policy)
        assert jnp.allclose(loss, ref, rtol=1e-5, atol=1e-5), (B, A, loss, ref)

    print("KERNEL_OK")
</pallas_src>

<mosaic_0001>
module attributes {stable_mosaic.version = 11 : i64} {
  func.func @kernel(%arg0: i32, %arg1: i32, %arg2: memref<8x32xf32, #tpu.memory_space<vmem>>, %arg3: memref<8x32xf32, #tpu.memory_space<vmem>>, %arg4: memref<1x128xf32, #tpu.memory_space<vmem>>, %arg5: memref<8x32xf32, #tpu.memory_space<vmem>>) attributes {dimension_semantics = [#tpu.dimension_semantics<parallel>, #tpu.dimension_semantics<arbitrary>], iteration_bounds = array<i64: 2, 1>, scalar_prefetch = 0 : i64, scratch_operands = 1 : i64, tpu.core_type = #tpu.core_type<tc>, window_params = [{transform_indices = @transform_0, window_bounds = array<i64: 8, 32>}, {transform_indices = @transform_1, window_bounds = array<i64: 8, 32>}, {transform_indices = @transform_2, window_bounds = array<i64: 1, 128>}]} {
    %c0_i32 = arith.constant 0 : i32
    %0 = arith.cmpi eq, %arg1, %c0_i32 : i32
    %1 = arith.extui %0 : i1 to i32
    %c0_i32_0 = arith.constant 0 : i32
    %2 = arith.cmpi ne, %1, %c0_i32_0 : i32
    scf.if %2 {
      %cst_12 = arith.constant 0.000000e+00 : f32
      %25 = vector.broadcast %cst_12 : f32 to vector<8x32xf32>
      %c0_13 = arith.constant 0 : index
      %c0_14 = arith.constant 0 : index
      %26 = vector.load %arg5[%c0_13, %c0_14] : memref<8x32xf32, #tpu.memory_space<vmem>>, vector<8x32xf32>
      tpu.vector_store %arg5[%c0_13, %c0_14], %25 {strides = array<i32>} : memref<8x32xf32, #tpu.memory_space<vmem>>, vector<8x32xf32>,
    } else {
    }
    %c0 = arith.constant 0 : index
    %c0_1 = arith.constant 0 : index
    %3 = vector.load %arg3[%c0, %c0_1] : memref<8x32xf32, #tpu.memory_space<vmem>>, vector<8x32xf32>
    %c0_2 = arith.constant 0 : index
    %c0_3 = arith.constant 0 : index
    %4 = vector.load %arg2[%c0_2, %c0_3] : memref<8x32xf32, #tpu.memory_space<vmem>>, vector<8x32xf32>
    %cst = arith.constant 9.99999993E-9 : f32
    %5 = vector.broadcast %cst : f32 to vector<8x32xf32>
    %6 = arith.addf %5, %4 : vector<8x32xf32>
    %7 = math.log %6 : vector<8x32xf32>
    %8 = arith.mulf %3, %7 : vector<8x32xf32>
    %c1_i32 = arith.constant 1 : i32
    %9 = arith.muli %arg0, %c1_i32 : i32
    %10 = arith.addi %9, %arg1 : i32
    %c8_i32 = arith.constant 8 : i32
    %11 = arith.muli %10, %c8_i32 : i32
    %12 = tpu.iota {dimensions = array<i32: 0>} : vector<8x32xi32>
    %13 = vector.broadcast %11 : i32 to vector<8x32xi32>
    %14 = arith.addi %13, %12 : vector<8x32xi32>
    %c8_i32_4 = arith.constant 8 : i32
    %15 = vector.broadcast %c8_i32_4 : i32 to vector<8x32xi32>
    %16 = arith.cmpi slt, %14, %15 : vector<8x32xi32>
    %cst_5 = arith.constant 0.000000e+00 : f32
    %17 = vector.broadcast %cst_5 : f32 to vector<8x32xf32>
    %18 = arith.select %16, %8, %17 : vector<8x32xi1>, vector<8x32xf32>
    %c0_6 = arith.constant 0 : index
    %c0_7 = arith.constant 0 : index
    %19 = vector.load %arg5[%c0_6, %c0_7] : memref<8x32xf32, #tpu.memory_space<vmem>>, vector<8x32xf32>
    %20 = arith.addf %19, %18 : vector<8x32xf32>
    %c0_8 = arith.constant 0 : index
    %c0_9 = arith.constant 0 : index
    %21 = vector.load %arg5[%c0_8, %c0_9] : memref<8x32xf32, #tpu.memory_space<vmem>>, vector<8x32xf32>
    tpu.vector_store %arg5[%c0_8, %c0_9], %20 {strides = array<i32>} : memref<8x32xf32, #tpu.memory_space<vmem>>, vector<8x32xf32>,
    %c0_i32_10 = arith.constant 0 : i32
    %22 = arith.cmpi eq, %arg1, %c0_i32_10 : i32
    %23 = arith.extui %22 : i1 to i32
    %c0_i32_11 = arith.constant 0 : i32
    %24 = arith.cmpi ne, %23, %c0_i32_11 : i32
    scf.if %24 {
      %c0_12 = arith.constant 0 : index
      %c0_13 = arith.constant 0 : index
      %25 = vector.load %arg5[%c0_12, %c0_13] : memref<8x32xf32, #tpu.memory_space<vmem>>, vector<8x32xf32>
      %26 = vector.shape_cast %25 : vector<8x32xf32> to vector<1x8x32xf32>
      %cst_14 = arith.constant dense<0.000000e+00> : vector<1xf32>
      %27 = vector.multi_reduction <add>, %26, %cst_14 [1, 2] : vector<1x8x32xf32> to vector<1xf32>
      %28 = vector.shape_cast %27 : vector<1xf32> to vector<1x1x1xf32>
      %29 = vector.extract %28[0, 0, 0] : f32 from vector<1x1x1xf32>
      %30 = vector.broadcast %29 : f32 to vector<1x1xf32>
      %31 = vector.shape_cast %30 : vector<1x1xf32> to vector<1x1xf32>
      %32 = vector.broadcast %31 : vector<1x1xf32> to vector<1x128xf32>
      %c0_15 = arith.constant 0 : index
      %c0_16 = arith.constant 0 : index
      %33 = vector.load %arg4[%c0_15, %c0_16] : memref<1x128xf32, #tpu.memory_space<vmem>>, vector<1x128xf32>
      tpu.vector_store %arg4[%c0_15, %c0_16], %32 {strides = array<i32>} : memref<1x128xf32, #tpu.memory_space<vmem>>, vector<1x128xf32>,
    } else {
    }
    return
  }
  func.func @transform_0(%arg0: i32, %arg1: i32) -> (i32, i32) {
    %c1_i32 = arith.constant 1 : i32
    %0 = arith.muli %arg0, %c1_i32 : i32
    %1 = arith.addi %0, %arg1 : i32
    %c0_i32 = arith.constant 0 : i32
    %2 = arith.minsi %1, %c0_i32 : i32
    %c0_i32_0 = arith.constant 0 : i32
    %c0_i32_1 = arith.constant 0 : i32
    return %2, %c0_i32_0 : i32, i32
  }
  func.func @transform_1(%arg0: i32, %arg1: i32) -> (i32, i32) {
    %c1_i32 = arith.constant 1 : i32
    %0 = arith.muli %arg0, %c1_i32 : i32
    %1 = arith.addi %0, %arg1 : i32
    %c0_i32 = arith.constant 0 : i32
    %2 = arith.minsi %1, %c0_i32 : i32
    %c0_i32_0 = arith.constant 0 : i32
    %c0_i32_1 = arith.constant 0 : i32
    return %2, %c0_i32_0 : i32, i32
  }
  func.func @transform_2(%arg0: i32, %arg1: i32) -> (i32, i32) {
    %c0_i32 = arith.constant 0 : i32
    %c0_i32_0 = arith.constant 0 : i32
    return %c0_i32, %arg0 : i32, i32
  }
}

</mosaic_0001>

<bundles_post_ra>
// kernel: tpu_custom_call.1
= control target key start
LH: loop header
LB: loop body
LE: loop exit
PB: predicated region body
PF: predicated region fallthrough
CT: control target
= control target key end

     0   :  { %7 = vsyncpa [#allocation4], 0  ;;  %s885_s0 = inlined_call_operand.hbm [shape: f32[8,32], index: 0, kind: input, shape index: {}]   ;;  %s886_s1 = inlined_call_operand.hbm [shape: f32[8,32], index: 1, kind: input, shape index: {}]   ;;  %s887_s2 = inlined_call_operand.hbm [shape: f32[1,256], index: 2, kind: output, shape index: {}]  }
   0x1   :  { %9 = vsyncpa [#allocation4 + $0x1], 0 }
   0x2   :  { %10 = vsyncpa [#allocation7], 0 }
   0x3   :  { %12 = vsyncpa [#allocation7 + $0x1], 0 }
   0x4   :  { %13 = vsyncpa [#allocation5], 0 }
   0x5   :  { %15 = vsyncpa [#allocation5 + $0x1], 0  ;;  %s680_s9 = smov 0   ;;  %s682_s10 = smov 0  }
   0x6   :  { %s684_s11 = smov 0   ;;  %s686_s12 = smov 0  }
   0x7   :  { %s688_s13 = smov 0   ;;  %s690_s14 = smov 0  }
   0x8   :  { %s692_s15 = smov 0   ;;  %s694_s16 = smov 0  }
   0x9 LB: > { %s381_s17 = sadd.s32 4294967295, %s659_s16   ;;  %s382_s18 = sadd.s32 4294967294, %s659_s16   ;;  %s659_s16 = sphi %s694_s16, %s21_s16   ;;  %s655_s15 = sphi %s692_s15, %s908_s15   ;;  %s651_s14 = sphi %s690_s14, %s907_s14   ;;  %s647_s13 = sphi %s688_s13, %s875_s13   ;;  %s643_s12 = sphi %s686_s12, %s906_s12   ;;  %s639_s11 = sphi %s684_s11, %s905_s11   ;;  %s635_s10 = sphi %s682_s10, %s904_s10   ;;  %s631_s9 = sphi %s680_s9, %s903_s9  }
   0xa   : > { %s33_s19 = sadd.s32 1, %s655_s15  ;;  %p628_p1 = scmp.ne.s32.totalorder %s647_s13, 0 }
   0xb   : > { %p35_p0 = scmp.ge.s32.totalorder %s33_s19, 2  ;;  %p54_p2 = scmp.eq.s32.totalorder %s659_s16, 0 }
   0xc   : > { %p59_p3 = scmp.ne.s32.totalorder %s647_s13, %s643_s12  ;;  %p60_p5 = scmp.eq.s32.totalorder %s381_s17, 0 }
   0xd   : > { %s910_s19 = smov (%p35_p0, %s33_s19), 0  ;;  %p726_p4 = por %p628_p1, %p54_p2 }
   0xe   : > { %p730_p6 = por %p60_p5, %p59_p3  ;;  %s101_s22 = ssub.s32 %s655_s15, %s910_s19 }
   0xf   : > { %p102_p7 = scmp.eq.s32.totalorder %s101_s22, 0  ;;  %s104_s23 = sadd.s32 1, %s639_s11 }
  0x10   : > { %s891_s21 = scalar_select %p730_p6, 1, 0 }
  0x11   : > { %s738_s24 = scalar_select %p102_p7, %s639_s11, %s104_s23  }
  0x12   : > { %p114_p8 = scmp.ne.s32.totalorder %s639_s11, %s635_s10  ;;  %p115_p9 = scmp.eq.s32.totalorder %s381_s17, 1 }
  0x13   : > { %p120_p10 = scmp.ne.s32.totalorder %s635_s10, %s631_s9  ;;  %p121_p11 = scmp.eq.s32.totalorder %s382_s18, 1 }
  0x14   : > { %p744_p12 = por %p115_p9, %p114_p8  ;;  %p415_p1 = scmp.lt.s32.totalorder %s659_s16, 2 }
  0x15   : > { %p749_p0 = por %p121_p11, %p120_p10  ;;  %s661_s27 = smov [#allocation3]  }
  0x16   : > { %s892_s25 = scalar_select %p744_p12, 1, 0 }
  0x17   : > { %s893_s26 = scalar_select %p749_p0, 1, 0 }
  0x18   : > { %s155_s28 = sshll.u32 %s661_s27, 4  ;;  %p756_p2 = pnand %p415_p1, %p726_p4  ;;  %s156_s28 = int_to_ptr.vmem [resolvable:$true] %s155_s28 }
  0x19   : > { %s492_s4 = scalar_lea.hbm %s885_s0, 128 }
  0x1a   : > { %p493_p7 = scmp.ne.s32.totalorder %s885_s0, %s492_s4  ;;  %p494_p8 = pneg %p756_p2 }
  0x1b   : > { %p499_p10 = scmp.lt.u32.totalorder %s492_s4, %s492_s4  ;;  %p501_p11 = scmp.lt.u32.totalorder %s492_s4, %s885_s0 }
  0x1c   : > { %p495_p4 = pnand %p494_p8, %p493_p7 }
  0x1d   : > { %p502_p1 = por %p501_p11, %p499_p10 }
  0x1e   : > { %p496_p9 = pneg %p495_p4 }
  0x20   : > { %p503_p13 = pnand %p502_p1, %p496_p9 }
  0x22   : > { %506 = shalt.err (!%p503_p13)
}
  0x23   : > { %s507_s12 = scalar_lea.vmem %s156_s28, 128  ;;  %s514_s17 = scalar_lea.vmem %s156_s28, 256 }
  0x24   : > { %p508_p3 = scmp.ne.s32.totalorder %s156_s28, %s507_s12  ;;  %p515_p12 = scmp.lt.s32.totalorder %s156_s28, %s156_s28 }
  0x25   : > { %p516_p6 = scmp.lt.s32.totalorder %s514_s17, %s507_s12 }
  0x26   : > { %p510_p5 = pnand %p508_p3, %p494_p8 }
  0x27   : > { %p517_p7 = por %p516_p6, %p515_p12 }
  0x28   : > { %p511_p0 = pneg %p510_p5 }
  0x2a   : > { %p518_p4 = pnand %p517_p7, %p511_p0 }
  0x2c   : > { %521 = shalt.err (!%p518_p4)
}
  0x2d   : > { %407 = dma.hbm_to_vmem [thread:$0]  (!%p756_p2), %s885_s0, 128, %s156_s28, [#allocation4]  }
  0x2e   : > { %p895_p13 = scmp.lt.s32.totalorder %s659_s16, 3  ;;  %p896_p9 = scmp.ge.s32.totalorder %s659_s16, 1 }
  0x2f   : > { %s662_s23 = smov [#allocation6]   ;;  %s522_s4 = scalar_lea.hbm %s886_s1, 128 }
  0x30   : > { %p788_p10 = pnand %p896_p9, %p895_p13  ;;  %s176_s27 = sshll.u32 %s662_s23, 4  ;;  %s177_s27 = int_to_ptr.vmem [resolvable:$true] %s176_s27 }
  0x31   : > { %p523_p6 = scmp.ne.s32.totalorder %s886_s1, %s522_s4  ;;  %p529_p3 = scmp.lt.u32.totalorder %s522_s4, %s522_s4 }
  0x32   : > { %s897_s22 = scalar_select %p788_p10, 1, 0 }
  0x33   : > { %p525_p12 = pnand %p523_p6, %p494_p8  ;;  %p531_p5 = scmp.lt.u32.totalorder %s522_s4, %s886_s1 }
  0x35   : > { %p526_p0 = pneg %p525_p12  ;;  %p532_p11 = por %p531_p5, %p529_p3 }
  0x37   : > { %p533_p1 = pnand %p532_p11, %p526_p0 }
  0x39   : > { %536 = shalt.err (!%p533_p1)
}
  0x3a   : > { %s537_s8 = scalar_lea.vmem %s177_s27, 128  ;;  %s544_s12 = scalar_lea.vmem %s177_s27, 256 }
  0x3b   : > { %p538_p7 = scmp.ne.s32.totalorder %s177_s27, %s537_s8  ;;  %p545_p9 = scmp.lt.s32.totalorder %s177_s27, %s177_s27 }
  0x3c   : > { %p546_p10 = scmp.lt.s32.totalorder %s544_s12, %s537_s8 }
  0x3d   : > { %p540_p4 = pnand %p538_p7, %p494_p8 }
  0x3e   : > { %p547_p6 = por %p546_p10, %p545_p9 }
  0x3f   : > { %p541_p13 = pneg %p540_p4 }
  0x41   : > { %p548_p12 = pnand %p547_p6, %p541_p13 }
  0x43   : > { %551 = shalt.err (!%p548_p12)
}
  0x44   : > { %410 = dma.hbm_to_vmem [thread:$0]  (!%p756_p2), %s886_s1, 128, %s177_s27, [#allocation7]  }
  0x45   : > { %p898_p0 = scmp.ne.s32.totalorder %s897_s22, 0 }
  0x46   : > { %s187_s20 = sand.u32 (!%p898_p0), 1, %s647_s13   ;;  %p899_p8 = scmp.ne.s32.totalorder (!%p898_p0), %s891_s21, 0 }
  0x47   : > { %185 = sbr.rel (%p898_p0) target bundleno = 330 (0x14a), region = 28  ;;  %s390_s23 = sshll.u32 (!%p898_p0), %s187_s20, 3 }
  0x48   : > { %s188_s30 = scalar_lea.sflag (!%p898_p0), [#allocation4], %s187_s20  ;;  %s191_s3 = scalar_lea.vmem (!%p898_p0), [#allocation3], %s390_s23 }
  0x4e   : > { %617 = dma.done.wait (%p899_p8), %s188_s30, 128  }
  0x4f   : > { %619 = vsyncadd (%p899_p8), %s188_s30, 4294967168  ;;  %s197_s29 = scalar_lea.sflag [#allocation7], %s187_s20  ;;  %s200_s4 = scalar_lea.vmem [#allocation6], %s390_s23 }
  0x50   : > { %621 = dma.done.wait (%p899_p8), %s197_s29, 128  }
  0x51   : > { %623 = vsyncadd (%p899_p8), %s197_s29, 4294967168  ;;  %vm235_vm0 = vcmask 261120   ;;  %v663_v0 = vmov 0.0   ;;  %v238_v1 = vld [vmem:[%s191_s3] sm:$0xff]  ;;  %v245_v3 = vlaneseq  ;;  %s392_s22 = sshll.u32 %s651_s14, 3  ;;  %v237_v8 = vld [vmem:[%s200_s4] sm:$0xff] }
  0x52   : > { %236 = vst.msk [vmem:[#allocation2] sm:$0xff] %vm235_vm0, %v663_v0  ;;  %v239_v2 = vadd.f32 1e-08, %v238_v1  ;;  %v247_v5 = vstv %s392_s22  ;;  %s223_s21 = sand.u32 1, %s635_s10   ;;  %s393_s6 = sshll.u32 %s651_s14, 4 }
  0x53   : > { %v246_v4 = vshrl.u32 %v245_v3, 7  ;;  %s224_s27 = scalar_lea.vmem [#allocation8], %s223_s21  ;;  %s834_s12 = scalar_lea.hbm %s887_s2, %s393_s6 }
  0x54   : > { %490 = vlog2.f32 %v239_v2  ;;  %s284_s5 = sshll.u32 %s224_s27, 4  ;;  %s272_s17 = scalar_lea.sflag [#allocation5], %s223_s21  ;;  %s829_s5 = int_to_ptr.vmem [resolvable:$true] %s284_s5 }
  0x55   : > { %v248_v6 = vadd.s32 %v247_v5, %v246_v4  ;;  %s552_s18 = scalar_lea.vmem %s829_s5, 16  ;;  %p900_p10 = scmp.ne.s32.totalorder %s892_s25, 0 }
  0x56   : > { %p553_p2 = scmp.ne.s32.totalorder %s829_s5, %s552_s18  ;;  %s664_s14 = smov [#allocation8]  }
  0x57   : > { %vm249_vm1 = vcmp.lt.s32.totalorder %v248_v6, 8  ;;  %s556_s20 = sshll.u32 %s664_s14, 4  ;;  %s557_s20 = int_to_ptr.vmem [resolvable:$false] %s556_s20 }
  0x58   : > { %p554_p3 = pnand %p553_p2, %p900_p10  ;;  %s558_s23 = scalar_lea.vmem %s557_s20, 32 }
  0x59   : > { %v251_v11 = vld [vmem:[#allocation2] sm:$0xff]  ;;  %p559_p11 = scmp.lt.s32.totalorder %s829_s5, %s557_s20  ;;  %p560_p1 = scmp.lt.s32.totalorder %s558_s23, %s552_s18 }
  0x5a   : > { %p555_p5 = pneg %p554_p3 }
  0x5b   : > { %p561_p7 = por %p560_p1, %p559_p11 }
  0x5d   : > { %p562_p4 = pnand %p561_p7, %p555_p5 }
  0x5e   : > { %v491_v7 = vpop.eup %490 }
  0x5f   : > { %v241_v9 = vmul.f32 0.6931472, %v491_v7 }
  0x61   : > { %v242_v10 = vmul.f32 %v241_v9, %v237_v8 }
  0x63   : > { %v250_v12 = vsel %vm249_vm1, %v242_v10, 0.0 }
  0x64   : > { %v252_v13 = vadd.f32 %v251_v11, %v250_v12 }
  0x66   : > { %254 = vst.msk [vmem:[#allocation2] sm:$0xff] %vm235_vm0, %v252_v13 }
  0x6d   : > { %v258_v14 = vld [vmem:[#allocation2] sm:$0xff] }
  0x6e   : > { %v259_v15 = vsel %vm235_vm0, %v258_v14, 0.0 }
  0x6f   : > { %260 = vadd.xlane.f32.xlu0 %v259_v15 }
  0xfc   : > { %v261_v16 = vpop.xlane.xlu0 %260 }
  0xfd   : > { %v262_v17 = vrot.slane %v261_v16, 4 }
  0xff   : > { %v263_v18 = vadd.f32 %v262_v17, %v261_v16 }
 0x101   : > { %v264_v19 = vrot.slane %v263_v18, 2 }
 0x103   : > { %v265_v20 = vadd.f32 %v264_v19, %v263_v18 }
 0x105   : > { %v266_v21 = vrot.slane %v265_v20, 1 }
 0x107   : > { %v267_v22 = vadd.f32 %v266_v21, %v265_v20 }
 0x109   : > { %396 = vpush %v267_v22 }
 0x13a   : > { %s397_s28 = spop %396 }
 0x13b   : > { %v269_v23 = vstv %s397_s28 }
 0x13c   : > { %270 = vst [vmem:[%s224_s27] sm:$0x1] %v269_v23 }
 0x13d   : > { %565 = shalt.err (!%p562_p4)
}
 0x13e   : > { %s566_s30 = scalar_lea.hbm %s834_s12, 16  ;;  %s570_s4 = scalar_lea.hbm %s887_s2, 32 }
 0x13f   : > { %p567_p13 = scmp.ne.s32.totalorder %s834_s12, %s566_s30  ;;  %p571_p12 = scmp.lt.u32.totalorder %s834_s12, %s887_s2 }
 0x140   : > { %p572_p0 = scmp.lt.u32.totalorder %s570_s4, %s566_s30  ;;  %p574_p2 = scmp.lt.u32.totalorder %s566_s30, %s834_s12 }
 0x141   : > { %p568_p9 = pnand %p567_p13, %p900_p10 }
 0x142   : > { %p573_p8 = por %p572_p0, %p571_p12 }
 0x143   : > { %p569_p6 = pneg %p568_p9 }
 0x144   : > { %p575_p3 = por %p574_p2, %p573_p8 }
 0x146   : > { %p576_p5 = pnand %p575_p3, %p569_p6 }
 0x148   : > { %579 = shalt.err (!%p576_p5)
}
 0x149   : > { %402 = dma.vmem_to_hbm [thread:$0]  (%p900_p10), %s829_s5, 16, %s834_s12, %s272_s17  }
 0x14a PF: > { %s296_s27 = sand.u32 1, %s631_s9   ;;  %p901_p11 = scmp.ne.s32.totalorder %s893_s26, 0 }
 0x14b   : > { %p902_p1 = scmp.ge.s32.totalorder %s659_s16, 2  ;;  %s297_s6 = scalar_lea.sflag [#allocation5], %s296_s27 }
 0x14d   : > { %p412_p7 = pnand %p902_p1, %p901_p11 }
 0x14f   : > { %625 = dma.done.wait (!%p412_p7), %s297_s6, 16  }
 0x150   : > { %627 = vsyncadd (!%p412_p7), %s297_s6, 4294967280  ;;  %s21_s16 = sadd.s32 1, %s659_s16   ;;  %s903_s9 = smov %s635_s10 }
 0x151   : > { %p18_p4 = scmp.ge.s32.totalorder %s21_s16, 4   ;;  %s904_s10 = smov %s639_s11 }
 0x152   : > { %s905_s11 = smov %s738_s24  ;;  %s906_s12 = smov %s647_s13 }
 0x153   : > { %s875_s13 = smov 0   ;;  %s907_s14 = smov %s655_s15 }
 0x154   : > { %s908_s15 = smov %s910_s19  ;;  %20 = sbr.rel (!%p18_p4) target bundleno = 9 (0x9), region = 94 }
 0x15b   :  { %301 = vsyncpa [#allocation4], 1 }
 0x15c   :  { %303 = vsyncpa [#allocation4 + $0x1], 1 }
 0x15d   :  { %304 = vsyncpa [#allocation7], 1 }
 0x15e   :  { %306 = vsyncpa [#allocation7 + $0x1], 1 }
 0x15f   :  { %307 = vsyncpa [#allocation5], 1 }
 0x160   :  { %309 = vsyncpa [#allocation5 + $0x1], 1 }

</bundles_post_ra>
